<compile_context>
chip_gen: v7x
topology: tpu7x:2x2x1
jax: 0.10.0
libtpu: 0.0.40
codegen_flags: <defaults>
</compile_context>

<pallas_src>
import functools
import math

import jax
import jax.numpy as jnp
from jax.experimental import pallas as pl
from jax.experimental.pallas import tpu as pltpu


# ----------------------------------------------------------------------------
# Helpers
# ----------------------------------------------------------------------------

def _round_up(x, m):
    return ((x + m - 1) // m) * m


def _vmem_budget_bytes():
    """Usable VMEM budget: physical capacity minus ~25% headroom for the
    compiler's internal scratch / semaphores / metadata."""
    try:
        phys = int(pltpu.get_tpu_info().vmem_capacity_bytes)
    except Exception:
        phys = 64 << 20  # conservative fallback (v7x per-TC size)
    return phys * 3 // 4


def _activate(a, apply_swish):
    return a * jax.nn.sigmoid(a) if apply_swish else a


# ----------------------------------------------------------------------------
# Kernels
# ----------------------------------------------------------------------------

def _make_fused_kernel(ensemble_size, apply_swish):
    """One grid step computes all E members for one B tile (E loop unrolled)."""

    def kernel(x_ref, w_ref, b_ref, o_ref):
        # x_ref: (E, TB, In), w_ref: (E, In, Op), b_ref: (E, 1, Op), o_ref: (E, TB, Op)
        # Unrolled at trace time; each member is stored immediately so at most
        # one (TB, Op) f32 result is live at a time (bounded live ranges).
        for e in range(ensemble_size):
            acc = jnp.dot(x_ref[e], w_ref[e], preferred_element_type=jnp.float32)
            acc = acc + b_ref[e].astype(jnp.float32)
            o_ref[e] = _activate(acc, apply_swish).astype(o_ref.dtype)

    return kernel


def _make_tiled_kernel(apply_swish):
    """Per-(ensemble, B-tile, K-tile) kernel with a resident f32 accumulator."""

    def kernel(x_ref, w_ref, b_ref, o_ref, acc_ref):
        # x_ref: (TB, TK), w_ref: (TK, Op), b_ref: (1, Op), o_ref/acc_ref: (TB, Op)
        k = pl.program_id(2)

        @pl.when(k == 0)
        def _():
            acc_ref[...] = jnp.zeros_like(acc_ref)

        acc_ref[...] += jnp.dot(x_ref[...], w_ref[...],
                                preferred_element_type=jnp.float32)

        @pl.when(k == pl.num_programs(2) - 1)
        def _():
            a = acc_ref[...] + b_ref[...].astype(jnp.float32)
            o_ref[...] = _activate(a, apply_swish).astype(o_ref.dtype)

    return kernel


# ----------------------------------------------------------------------------
# Wrappers
# ----------------------------------------------------------------------------

def _forward_fused(x, weights, biases, out_dtype, vmem_limit, apply_swish):
    E, B, In = x.shape
    Op = weights.shape[2]

    # 2-4 sublane-aligned B tiles once B >= 32 so input DMA / compute / output
    # DMA overlap instead of one fully-serialized grid step.
    if B >= 32:
        tile_b = min(B, _round_up(-(-B // 4), 8))
    else:
        tile_b = B
    nb = pl.cdiv(B, tile_b)

    return pl.pallas_call(
        _make_fused_kernel(E, apply_swish),
        out_shape=jax.ShapeDtypeStruct((E, B, Op), out_dtype),
        grid=(nb,),
        in_specs=[
            pl.BlockSpec((E, tile_b, In), lambda i: (0, i, 0)),
            pl.BlockSpec((E, In, Op), lambda i: (0, 0, 0)),   # weights resident
            pl.BlockSpec((E, 1, Op), lambda i: (0, 0, 0)),    # biases resident
        ],
        out_specs=pl.BlockSpec((E, tile_b, Op), lambda i: (0, i, 0)),
        compiler_params=pltpu.CompilerParams(
            dimension_semantics=("parallel",),  # B tiles are independent
            vmem_limit_bytes=vmem_limit,
        ),
    )(x, weights, biases)


def _forward_tiled(x, weights, biases, out_dtype, vmem_limit, budget,
                   apply_swish, tile_b=None, tile_k=None):
    E, B, In = x.shape
    Op = weights.shape[2]
    x_item = x.dtype.itemsize
    w_item = weights.dtype.itemsize
    o_item = jnp.dtype(out_dtype).itemsize

    # ---- contraction (K) tiling & weight buffering --------------------------
    w_pipeline = None
    if tile_k is None:
        if 2 * In * Op * w_item <= budget // 2:
            tile_k = In                                # resident, double-buffered
        elif In * Op * w_item <= budget // 2:
            tile_k = In                                # resident, single-buffered:
            w_pipeline = pl.Buffered(1)                # block only changes per E step
        else:
            # Split the contraction; the tile must be a multiple of 128 (lane
            # dim of x).  Prefer a divisor of In to avoid padding.
            cap = max(128, ((budget // 2) // max(1, 2 * Op * w_item)) // 128 * 128)
            tile_k = 128
            for cand in range(cap, 127, -128):
                if In % cand == 0:
                    tile_k = cand
                    break

    # Zero-pad the contraction dim if tile_k does not divide it (zero rows/cols
    # contribute nothing to the accumulation).
    In_p = _round_up(In, tile_k)
    if In_p != In:
        x = jnp.pad(x, ((0, 0), (0, 0), (0, In_p - In)))
        weights = jnp.pad(weights, ((0, 0), (0, In_p - In), (0, 0)))
    nk = In_p // tile_k

    # ---- batch (B) tiling: biggest candidate that fits the VMEM budget ------
    if tile_b is None:
        w_resident = (1 if w_pipeline is not None else 2) * tile_k * Op * w_item
        tile_b = 8 if B >= 8 else B
        for t in (1024, 512, 256, 128, 64, 32, 16, 8):
            if t > B:
                continue
            need = (w_resident
                    + t * Op * 4                               # f32 accumulator
                    + 2 * t * (tile_k * x_item + Op * o_item))  # x / out double buffers
            if need <= budget:
                tile_b = t
                break
    nb = pl.cdiv(B, tile_b)

    w_spec_kwargs = {} if w_pipeline is None else {"pipeline_mode": w_pipeline}

    # TODO(synk): for extreme Out (so that even one (tile_k, Out) weight slab
    # overflows VMEM) add an N grid axis as well.
    grid_spec = pltpu.PrefetchScalarGridSpec(
        num_scalar_prefetch=0,
        grid=(E, nb, nk),  # K innermost (reduction); weight block constant in B
        in_specs=[
            pl.BlockSpec((None, tile_b, tile_k), lambda e, b, k: (e, b, k)),
            pl.BlockSpec((None, tile_k, Op), lambda e, b, k: (e, k, 0),
                         **w_spec_kwargs),
            pl.BlockSpec((None, 1, Op), lambda e, b, k: (e, 0, 0)),
        ],
        out_specs=pl.BlockSpec((None, tile_b, Op), lambda e, b, k: (e, b, 0)),
        scratch_shapes=[pltpu.VMEM((tile_b, Op), jnp.float32)],
    )

    return pl.pallas_call(
        _make_tiled_kernel(apply_swish),
        out_shape=jax.ShapeDtypeStruct((E, B, Op), out_dtype),
        grid_spec=grid_spec,
        compiler_params=pltpu.CompilerParams(
            # E and B produce disjoint output blocks -> either can shard across
            # v7x's two TensorCores; K is the reduction axis.
            dimension_semantics=("parallel", "parallel", "arbitrary"),
            vmem_limit_bytes=vmem_limit,
        ),
    )(x, weights, biases)


@functools.partial(jax.jit, static_argnames=("use_bf16_matmul", "act_fn"))
def ensemble_dense_forward(x, weights, biases, *, use_bf16_matmul=False,
                           act_fn="swish"):
    """x: (E, B, In), weights: (E, In, Out), biases: (E, 1, Out) -> (E, B, Out).

    use_bf16_matmul=True casts x and weights to bf16 before the kernel (f32
    accumulation, f32 bias + activation) -- recommended on all generations for
    realistic hidden sizes.
    """
    if act_fn == "swish":
        apply_swish = True
    elif act_fn == "linear":
        apply_swish = False
    else:
        raise ValueError(f"unsupported act_fn: {act_fn}")

    E, B, In = x.shape
    Out = weights.shape[2]
    out_dtype = x.dtype

    budget = _vmem_budget_bytes()
    vmem_limit = budget

    xc, wc, bc = x, weights, biases
    if use_bf16_matmul:
        # Upstream bf16: halves x/weight HBM traffic and weight VMEM residency.
        # TODO(synk): keep model parameters in bf16 to avoid the per-call cast.
        xc = xc.astype(jnp.bfloat16)
        wc = wc.astype(jnp.bfloat16)

    # Lane-dense output: zero-pad Out to a multiple of 128 (zero weight/bias
    # columns -> padded outputs are activation(0), sliced away below).
    Op = _round_up(Out, 128)
    if Op != Out:
        wc = jnp.pad(wc, ((0, 0), (0, 0), (0, Op - Out)))
        bc = jnp.pad(bc, ((0, 0), (0, 0), (0, Op - Out)))

    total_bytes = (xc.size * xc.dtype.itemsize
                   + wc.size * wc.dtype.itemsize
                   + bc.size * bc.dtype.itemsize
                   + E * B * Op * jnp.dtype(out_dtype).itemsize)
    small_cutoff = min(12 << 20, budget // 4)

    # TODO(synk): for very small members (E*In <= 256) a block-diagonal
    # (B, E*In) @ (E*In, E*Out) single matmul would save E-1 MXU passes; it
    # needs a consumer of the folded (B, E*Out) layout to pay off.
    if total_bytes <= small_cutoff:
        out = _forward_fused(xc, wc, bc, out_dtype, vmem_limit, apply_swish)
    else:
        out = _forward_tiled(xc, wc, bc, out_dtype, vmem_limit, budget,
                             apply_swish)

    if Op != Out:
        out = out[:, :, :Out]
    return out


# ----------------------------------------------------------------------------
# Parameter init (matches reset_parameters) and pure-JAX reference
# ----------------------------------------------------------------------------

def init_params(key, ensemble_size, in_size, out_size, act_fn="swish"):
    ws = []
    for e in range(ensemble_size):
        k = jax.random.fold_in(key, e)
        if act_fn == "swish":
            limit = math.sqrt(6.0 / (in_size + out_size))  # xavier_uniform_
            w = jax.random.uniform(
                k, (in_size, out_size), minval=-limit, maxval=limit,
                dtype=jnp.float32)
        else:
            std = math.sqrt(2.0 / (in_size + out_size))    # xavier_normal_
            w = std * jax.random.normal(k, (in_size, out_size), dtype=jnp.float32)
        ws.append(w)
    weights = jnp.stack(ws, axis=0)                                 # (E, In, Out)
    biases = jnp.zeros((ensemble_size, 1, out_size), jnp.float32)   # (E, 1, Out)
    return weights, biases


def _reference(x, weights, biases):
    op = jnp.einsum("ebi,eio->ebo", x, weights) + biases
    return op * jax.nn.sigmoid(op)


# ----------------------------------------------------------------------------
# Demo / correctness checks
# ----------------------------------------------------------------------------

if __name__ == "__main__":
    key = jax.random.PRNGKey(0)
    kx, kp = jax.random.split(key)
    budget = _vmem_budget_bytes()

    # 1) Small fused path: Out=32 padded to 128 lanes, single B tile.
    E, B, IN, OUT = 4, 8, 32, 32
    x = jax.random.normal(kx, (E, B, IN), dtype=jnp.float32)
    weights, biases = init_params(kp, E, IN, OUT, act_fn="swish")
    out = jax.block_until_ready(ensemble_dense_forward(x, weights, biases))
    ref = _reference(x, weights, biases)
    assert out.shape == (E, B, OUT)
    assert jnp.allclose(out, ref, atol=1e-5, rtol=1e-5)

    # bf16 MXU operands (cast outside the kernel), looser tolerance.
    out_bf16 = jax.block_until_ready(
        ensemble_dense_forward(x, weights, biases, use_bf16_matmul=True))
    assert jnp.allclose(out_bf16, ref, atol=2e-2, rtol=2e-2)

    # 2) Fused path with multiple B tiles and a non-multiple-of-128 Out
    #    (exercises padding + post-kernel slice, lane-dense stores).
    E2, B2, IN2, OUT2 = 3, 64, 48, 40
    x2 = jax.random.normal(jax.random.fold_in(kx, 1), (E2, B2, IN2),
                           dtype=jnp.float32)
    w2, b2 = init_params(jax.random.fold_in(kp, 1), E2, IN2, OUT2, act_fn="swish")
    out2 = jax.block_until_ready(ensemble_dense_forward(x2, w2, b2))
    ref2 = _reference(x2, w2, b2)
    assert out2.shape == (E2, B2, OUT2)
    assert jnp.allclose(out2, ref2, atol=1e-5, rtol=1e-5)

    # 3) Tiled path with explicit B and K tiling (exercises the accumulator,
    #    pl.when init/finalize and resident bias blocks).
    E3, B3, IN3, OUT3 = 2, 256, 256, 128
    x3 = jax.random.normal(jax.random.fold_in(kx, 2), (E3, B3, IN3),
                           dtype=jnp.float32)
    w3, b3 = init_params(jax.random.fold_in(kp, 2), E3, IN3, OUT3, act_fn="swish")
    out3 = jax.block_until_ready(
        _forward_tiled(x3, w3, b3, jnp.float32, budget, budget,
                       apply_swish=True, tile_b=128, tile_k=128))
    ref3 = _reference(x3, w3, b3)
    assert out3.shape == (E3, B3, OUT3)
    assert jnp.allclose(out3, ref3, atol=1e-4, rtol=1e-4)

    print("KERNEL_OK")
</pallas_src>

<mosaic_0001>
module attributes {stable_mosaic.version = 11 : i64} {
  func.func @kernel(%arg0: i32, %arg1: memref<4x8x32xf32, #tpu.memory_space<vmem>>, %arg2: memref<4x32x128xf32, #tpu.memory_space<vmem>>, %arg3: memref<4x1x128xf32, #tpu.memory_space<vmem>>, %arg4: memref<4x8x128xf32, #tpu.memory_space<vmem>>) attributes {dimension_semantics = [#tpu.dimension_semantics<parallel>], iteration_bounds = array<i64: 1>, scalar_prefetch = 0 : i64, scratch_operands = 0 : i64, tpu.core_type = #tpu.core_type<tc>, window_params = [{transform_indices = @transform_0, window_bounds = array<i64: 4, 8, 32>}, {pipeline_mode = #tpu.pipeline_mode<synchronous>, transform_indices = @transform_1, window_bounds = array<i64: 4, 32, 128>}, {pipeline_mode = #tpu.pipeline_mode<synchronous>, transform_indices = @transform_2, window_bounds = array<i64: 4, 1, 128>}, {transform_indices = @transform_3, window_bounds = array<i64: 4, 8, 128>}]} {
    %c0 = arith.constant 0 : index
    %c0_0 = arith.constant 0 : index
    %c0_1 = arith.constant 0 : index
    %0 = vector.load %arg1[%c0, %c0_0, %c0_1] : memref<4x8x32xf32, #tpu.memory_space<vmem>>, vector<1x8x32xf32>
    %1 = vector.shape_cast %0 : vector<1x8x32xf32> to vector<8x32xf32>
    %c0_2 = arith.constant 0 : index
    %c0_3 = arith.constant 0 : index
    %c0_4 = arith.constant 0 : index
    %2 = vector.load %arg2[%c0_2, %c0_3, %c0_4] : memref<4x32x128xf32, #tpu.memory_space<vmem>>, vector<1x32x128xf32>
    %3 = vector.shape_cast %2 : vector<1x32x128xf32> to vector<32x128xf32>
    %cst = arith.constant dense<0.000000e+00> : vector<8x128xf32>
    %4 = tpu.matmul %1, %3, %cst {dimension_numbers = #tpu.dot_dimension_numbers<[1], [0], [0], [1], [0, 0, 1, 1], [], []>} : vector<8x32xf32>, vector<32x128xf32>, vector<8x128xf32> -> vector<8x128xf32>
    %c0_5 = arith.constant 0 : index
    %c0_6 = arith.constant 0 : index
    %c0_7 = arith.constant 0 : index
    %5 = vector.load %arg3[%c0_5, %c0_6, %c0_7] : memref<4x1x128xf32, #tpu.memory_space<vmem>>, vector<1x1x128xf32>
    %6 = vector.shape_cast %5 : vector<1x1x128xf32> to vector<1x128xf32>
    %7 = vector.broadcast %6 : vector<1x128xf32> to vector<8x128xf32>
    %8 = arith.addf %4, %7 : vector<8x128xf32>
    %9 = arith.negf %8 : vector<8x128xf32>
    %10 = math.exp %9 : vector<8x128xf32>
    %cst_8 = arith.constant 1.000000e+00 : f32
    %11 = vector.broadcast %cst_8 : f32 to vector<8x128xf32>
    %12 = arith.addf %11, %10 : vector<8x128xf32>
    %13 = arith.divf %11, %12 : vector<8x128xf32>
    %14 = arith.mulf %8, %13 : vector<8x128xf32>
    %c0_9 = arith.constant 0 : index
    %c0_10 = arith.constant 0 : index
    %c0_11 = arith.constant 0 : index
    %15 = vector.load %arg4[%c0_9, %c0_10, %c0_11] : memref<4x8x128xf32, #tpu.memory_space<vmem>>, vector<1x8x128xf32>
    %16 = vector.shape_cast %15 : vector<1x8x128xf32> to vector<8x128xf32>
    %17 = vector.shape_cast %14 : vector<8x128xf32> to vector<1x8x128xf32>
    tpu.vector_store %arg4[%c0_9, %c0_10, %c0_11], %17 {strides = array<i32>} : memref<4x8x128xf32, #tpu.memory_space<vmem>>, vector<1x8x128xf32>,
    %c1 = arith.constant 1 : index
    %c0_12 = arith.constant 0 : index
    %c0_13 = arith.constant 0 : index
    %18 = vector.load %arg1[%c1, %c0_12, %c0_13] : memref<4x8x32xf32, #tpu.memory_space<vmem>>, vector<1x8x32xf32>
    %19 = vector.shape_cast %18 : vector<1x8x32xf32> to vector<8x32xf32>
    %c1_14 = arith.constant 1 : index
    %c0_15 = arith.constant 0 : index
    %c0_16 = arith.constant 0 : index
    %20 = vector.load %arg2[%c1_14, %c0_15, %c0_16] : memref<4x32x128xf32, #tpu.memory_space<vmem>>, vector<1x32x128xf32>
    %21 = vector.shape_cast %20 : vector<1x32x128xf32> to vector<32x128xf32>
    %cst_17 = arith.constant dense<0.000000e+00> : vector<8x128xf32>
    %22 = tpu.matmul %19, %21, %cst_17 {dimension_numbers = #tpu.dot_dimension_numbers<[1], [0], [0], [1], [0, 0, 1, 1], [], []>} : vector<8x32xf32>, vector<32x128xf32>, vector<8x128xf32> -> vector<8x128xf32>
    %c1_18 = arith.constant 1 : index
    %c0_19 = arith.constant 0 : index
    %c0_20 = arith.constant 0 : index
    %23 = vector.load %arg3[%c1_18, %c0_19, %c0_20] : memref<4x1x128xf32, #tpu.memory_space<vmem>>, vector<1x1x128xf32>
    %24 = vector.shape_cast %23 : vector<1x1x128xf32> to vector<1x128xf32>
    %25 = vector.broadcast %24 : vector<1x128xf32> to vector<8x128xf32>
    %26 = arith.addf %22, %25 : vector<8x128xf32>
    %27 = arith.negf %26 : vector<8x128xf32>
    %28 = math.exp %27 : vector<8x128xf32>
    %cst_21 = arith.constant 1.000000e+00 : f32
    %29 = vector.broadcast %cst_21 : f32 to vector<8x128xf32>
    %30 = arith.addf %29, %28 : vector<8x128xf32>
    %31 = arith.divf %29, %30 : vector<8x128xf32>
    %32 = arith.mulf %26, %31 : vector<8x128xf32>
    %c1_22 = arith.constant 1 : index
    %c0_23 = arith.constant 0 : index
    %c0_24 = arith.constant 0 : index
    %33 = vector.load %arg4[%c1_22, %c0_23, %c0_24] : memref<4x8x128xf32, #tpu.memory_space<vmem>>, vector<1x8x128xf32>
    %34 = vector.shape_cast %33 : vector<1x8x128xf32> to vector<8x128xf32>
    %35 = vector.shape_cast %32 : vector<8x128xf32> to vector<1x8x128xf32>
    tpu.vector_store %arg4[%c1_22, %c0_23, %c0_24], %35 {strides = array<i32>} : memref<4x8x128xf32, #tpu.memory_space<vmem>>, vector<1x8x128xf32>,
    %c2 = arith.constant 2 : index
    %c0_25 = arith.constant 0 : index
    %c0_26 = arith.constant 0 : index
    %36 = vector.load %arg1[%c2, %c0_25, %c0_26] : memref<4x8x32xf32, #tpu.memory_space<vmem>>, vector<1x8x32xf32>
    %37 = vector.shape_cast %36 : vector<1x8x32xf32> to vector<8x32xf32>
    %c2_27 = arith.constant 2 : index
    %c0_28 = arith.constant 0 : index
    %c0_29 = arith.constant 0 : index
    %38 = vector.load %arg2[%c2_27, %c0_28, %c0_29] : memref<4x32x128xf32, #tpu.memory_space<vmem>>, vector<1x32x128xf32>
    %39 = vector.shape_cast %38 : vector<1x32x128xf32> to vector<32x128xf32>
    %cst_30 = arith.constant dense<0.000000e+00> : vector<8x128xf32>
    %40 = tpu.matmul %37, %39, %cst_30 {dimension_numbers = #tpu.dot_dimension_numbers<[1], [0], [0], [1], [0, 0, 1, 1], [], []>} : vector<8x32xf32>, vector<32x128xf32>, vector<8x128xf32> -> vector<8x128xf32>
    %c2_31 = arith.constant 2 : index
    %c0_32 = arith.constant 0 : index
    %c0_33 = arith.constant 0 : index
    %41 = vector.load %arg3[%c2_31, %c0_32, %c0_33] : memref<4x1x128xf32, #tpu.memory_space<vmem>>, vector<1x1x128xf32>
    %42 = vector.shape_cast %41 : vector<1x1x128xf32> to vector<1x128xf32>
    %43 = vector.broadcast %42 : vector<1x128xf32> to vector<8x128xf32>
    %44 = arith.addf %40, %43 : vector<8x128xf32>
    %45 = arith.negf %44 : vector<8x128xf32>
    %46 = math.exp %45 : vector<8x128xf32>
    %cst_34 = arith.constant 1.000000e+00 : f32
    %47 = vector.broadcast %cst_34 : f32 to vector<8x128xf32>
    %48 = arith.addf %47, %46 : vector<8x128xf32>
    %49 = arith.divf %47, %48 : vector<8x128xf32>
    %50 = arith.mulf %44, %49 : vector<8x128xf32>
    %c2_35 = arith.constant 2 : index
    %c0_36 = arith.constant 0 : index
    %c0_37 = arith.constant 0 : index
    %51 = vector.load %arg4[%c2_35, %c0_36, %c0_37] : memref<4x8x128xf32, #tpu.memory_space<vmem>>, vector<1x8x128xf32>
    %52 = vector.shape_cast %51 : vector<1x8x128xf32> to vector<8x128xf32>
    %53 = vector.shape_cast %50 : vector<8x128xf32> to vector<1x8x128xf32>
    tpu.vector_store %arg4[%c2_35, %c0_36, %c0_37], %53 {strides = array<i32>} : memref<4x8x128xf32, #tpu.memory_space<vmem>>, vector<1x8x128xf32>,
    %c3 = arith.constant 3 : index
    %c0_38 = arith.constant 0 : index
    %c0_39 = arith.constant 0 : index
    %54 = vector.load %arg1[%c3, %c0_38, %c0_39] : memref<4x8x32xf32, #tpu.memory_space<vmem>>, vector<1x8x32xf32>
    %55 = vector.shape_cast %54 : vector<1x8x32xf32> to vector<8x32xf32>
    %c3_40 = arith.constant 3 : index
    %c0_41 = arith.constant 0 : index
    %c0_42 = arith.constant 0 : index
    %56 = vector.load %arg2[%c3_40, %c0_41, %c0_42] : memref<4x32x128xf32, #tpu.memory_space<vmem>>, vector<1x32x128xf32>
    %57 = vector.shape_cast %56 : vector<1x32x128xf32> to vector<32x128xf32>
    %cst_43 = arith.constant dense<0.000000e+00> : vector<8x128xf32>
    %58 = tpu.matmul %55, %57, %cst_43 {dimension_numbers = #tpu.dot_dimension_numbers<[1], [0], [0], [1], [0, 0, 1, 1], [], []>} : vector<8x32xf32>, vector<32x128xf32>, vector<8x128xf32> -> vector<8x128xf32>
    %c3_44 = arith.constant 3 : index
    %c0_45 = arith.constant 0 : index
    %c0_46 = arith.constant 0 : index
    %59 = vector.load %arg3[%c3_44, %c0_45, %c0_46] : memref<4x1x128xf32, #tpu.memory_space<vmem>>, vector<1x1x128xf32>
    %60 = vector.shape_cast %59 : vector<1x1x128xf32> to vector<1x128xf32>
    %61 = vector.broadcast %60 : vector<1x128xf32> to vector<8x128xf32>
    %62 = arith.addf %58, %61 : vector<8x128xf32>
    %63 = arith.negf %62 : vector<8x128xf32>
    %64 = math.exp %63 : vector<8x128xf32>
    %cst_47 = arith.constant 1.000000e+00 : f32
    %65 = vector.broadcast %cst_47 : f32 to vector<8x128xf32>
    %66 = arith.addf %65, %64 : vector<8x128xf32>
    %67 = arith.divf %65, %66 : vector<8x128xf32>
    %68 = arith.mulf %62, %67 : vector<8x128xf32>
    %c3_48 = arith.constant 3 : index
    %c0_49 = arith.constant 0 : index
    %c0_50 = arith.constant 0 : index
    %69 = vector.load %arg4[%c3_48, %c0_49, %c0_50] : memref<4x8x128xf32, #tpu.memory_space<vmem>>, vector<1x8x128xf32>
    %70 = vector.shape_cast %69 : vector<1x8x128xf32> to vector<8x128xf32>
    %71 = vector.shape_cast %68 : vector<8x128xf32> to vector<1x8x128xf32>
    tpu.vector_store %arg4[%c3_48, %c0_49, %c0_50], %71 {strides = array<i32>} : memref<4x8x128xf32, #tpu.memory_space<vmem>>, vector<1x8x128xf32>,
    return
  }
  func.func @transform_0(%arg0: i32) -> (i32, i32, i32) {
    %c0_i32 = arith.constant 0 : i32
    %c0_i32_0 = arith.constant 0 : i32
    %c0_i32_1 = arith.constant 0 : i32
    return %c0_i32, %arg0, %c0_i32_0 : i32, i32, i32
  }
  func.func @transform_1(%arg0: i32) -> (i32, i32, i32) {
    %c0_i32 = arith.constant 0 : i32
    %c0_i32_0 = arith.constant 0 : i32
    %c0_i32_1 = arith.constant 0 : i32
    %c0_i32_2 = arith.constant 0 : i32
    return %c0_i32, %c0_i32_0, %c0_i32_1 : i32, i32, i32
  }
  func.func @transform_2(%arg0: i32) -> (i32, i32, i32) {
    %c0_i32 = arith.constant 0 : i32
    %c0_i32_0 = arith.constant 0 : i32
    %c0_i32_1 = arith.constant 0 : i32
    %c0_i32_2 = arith.constant 0 : i32
    return %c0_i32, %c0_i32_0, %c0_i32_1 : i32, i32, i32
  }
  func.func @transform_3(%arg0: i32) -> (i32, i32, i32) {
    %c0_i32 = arith.constant 0 : i32
    %c0_i32_0 = arith.constant 0 : i32
    %c0_i32_1 = arith.constant 0 : i32
    return %c0_i32, %arg0, %c0_i32_0 : i32, i32, i32
  }
}

</mosaic_0001>

<bundles_post_ra>
// kernel: ensemble_dense_forward.1
= control target key start
LH: loop header
LB: loop body
LE: loop exit
PB: predicated region body
PF: predicated region fallthrough
CT: control target
= control target key end

     0   :  { %v580_v3 = vmov 0.0|0.0   ;;  %vm581_vm0 = vmmov 0   ;;  %v582_v11 = vmov 0.0   ;;  %vm27_vm1 = vcmask 261120   ;;  %s698_s0 = inlined_call_operand.vmem [shape: f32[4,8,32], index: 0, kind: input, shape index: {}]   ;;  %s699_s1 = inlined_call_operand.vmem [shape: f32[4,32,128], index: 1, kind: input, shape index: {}]   ;;  %s700_s2 = inlined_call_operand.vmem [shape: f32[4,1,128], index: 2, kind: input, shape index: {}]   ;;  %s701_s3 = inlined_call_operand.hbm [shape: f32[4,8,128], index: 3, kind: output, shape index: {}]  }
   0x1   :  { %v16_v0 = vld [vmem:[%s699_s1] sm:$0xff]  ;;  %v17_v1 = vld [vmem:[%s699_s1 + $0x8] sm:$0xff]  ;;  %510 = vmatprep.subr.bf16.mxu0 %v580_v3  ;;  %516 = vmatprep.subr.bf16.mxu1 %v580_v3  ;;  %v18_v6 = vld [vmem:[%s699_s1 + $0x10] sm:$0xff] }
   0x2   :  { %v420_v2 = vld [vmem:[%s699_s1 + $0x20] sm:$0xff]  ;;  %v511_v4 = vpack.c.bf16 %v17_v1, %v16_v0  ;;  %v421_v5 = vld [vmem:[%s699_s1 + $0x28] sm:$0xff]  ;;  %v19_v7 = vld [vmem:[%s699_s1 + $0x18] sm:$0xff]  ;;  %474 = vmatprep.mubr.msk.f32.mxu0 %vm581_vm0, %v582_v11  ;;  %485 = vmatprep.mubr.msk.f32.mxu1 %vm581_vm0, %v582_v11 }
   0x3   :  { %v517_v8 = vpack.c.bf16 %v421_v5, %v420_v2  ;;  %v422_v9 = vld [vmem:[%s699_s1 + $0x30] sm:$0xff]  ;;  %v423_v10 = vld [vmem:[%s699_s1 + $0x38] sm:$0xff]  ;;  %v514_v12 = vpack.c.bf16 %v19_v7, %v18_v6  ;;  %v429_v14 = vld [vmem:[%s699_s1 + $0x40] sm:$0xff] }
   0x4   :  { %512 = vmatpush3.bf16.msra.mxu0 %v511_v4  ;;  %v520_v13 = vpack.c.bf16 %v423_v10, %v422_v9  ;;  %v430_v15 = vld [vmem:[%s699_s1 + $0x48] sm:$0xff]  ;;  %v438_v16 = vld [vmem:[%s699_s1 + $0x60] sm:$0xff] }
   0x5   :  { %518 = vmatpush3.bf16.msra.mxu1 %v517_v8  ;;  %513 = vmatprep.subr.bf16.mxu0 %v580_v3  ;;  %v439_v17 = vld [vmem:[%s699_s1 + $0x68] sm:$0xff]  ;;  %v15_v18 = vld [vmem:[%s698_s0] sm:$0xff]  ;;  %v523_v19 = vpack.c.bf16 %v430_v15, %v429_v14 }
   0x6   :  { %519 = vmatprep.subr.bf16.mxu1 %v580_v3 }
   0x8   :  { %515 = vmatpush3.bf16.msra.mxu0 %v514_v12 }
   0x9   :  { %8 = vsyncpa [#allocation3], 0  ;;  %521 = vmatpush3.bf16.msra.mxu1 %v520_v13  ;;  %v419_v20 = vld [vmem:[%s698_s0 + $0x8] sm:$0xff]  ;;  %522 = vmatprep.subr.bf16.mxu0 %v580_v3  ;;  %v529_v21 = vpack.c.bf16 %v439_v17, %v438_v16  ;;  %v431_v22 = vld [vmem:[%s699_s1 + $0x50] sm:$0xff] }
   0xa   :  { %v432_v23 = vld [vmem:[%s699_s1 + $0x58] sm:$0xff]  ;;  %528 = vmatprep.subr.bf16.mxu1 %v580_v3  ;;  %v440_v24 = vld [vmem:[%s699_s1 + $0x70] sm:$0xff]  ;;  %v416_v30 = vld [vmem:[%s700_s2] ss:$0 sm:$0xff] }
   0xb   :  { %v441_v25 = vld [vmem:[%s699_s1 + $0x78] sm:$0xff]  ;;  %475 = vmatmul.mubr.msk.f32.vlgmr.msra.gmra.mrb[0].mxu0 %vm27_vm1, %v15_v18  ;;  %v526_v26 = vpack.c.bf16 %v432_v23, %v431_v22  ;;  %v428_v28 = vld [vmem:[%s698_s0 + $0x10] sm:$0xff]  ;;  %v425_v31 = vld [vmem:[%s700_s2 + $0x1] ss:$0 sm:$0xff] }
   0xc   :  { %486 = vmatmul.mubr.msk.f32.vlgmr.msra.gmra.mrb[0].mxu1 %vm27_vm1, %v419_v20  ;;  %524 = vmatpush3.bf16.msra.mxu0 %v523_v19  ;;  %v532_v27 = vpack.c.bf16 %v441_v25, %v440_v24  ;;  %v437_v29 = vld [vmem:[%s698_s0 + $0x18] sm:$0xff]  ;;  %v434_v40 = vld [vmem:[%s700_s2 + $0x2] ss:$0 sm:$0xff]  ;;  %v443_v41 = vld [vmem:[%s700_s2 + $0x3] ss:$0 sm:$0xff]  ;;  %s583_s2 = smov [#allocation2]  }
   0xd   :  { %530 = vmatpush3.bf16.msra.mxu1 %v529_v21  ;;  %525 = vmatprep.subr.bf16.mxu0 %v580_v3  ;;  %s405_s4 = sshll.u32 %s583_s2, 4  ;;  %s406_s4 = int_to_ptr.vmem [resolvable:$true] %s405_s4 }
   0xe   :  { %531 = vmatprep.subr.bf16.mxu1 %v580_v3  ;;  %496 = vmatprep.mubr.msk.f32.mxu0 %vm581_vm0, %v582_v11  ;;  %s556_s5 = scalar_lea.vmem %s406_s4, 512  ;;  %p561_p1 = scmp.lt.s32.totalorder %s406_s4, %s406_s4 }
   0xf   :  { %507 = vmatprep.mubr.msk.f32.mxu1 %vm581_vm0, %v582_v11  ;;  %p557_p0 = scmp.ne.s32.totalorder %s406_s4, %s556_s5  ;;  %p562_p2 = scmp.lt.s32.totalorder %s556_s5, %s556_s5 }
  0x10   :  { %527 = vmatpush3.bf16.msra.mxu0 %v526_v26 }
  0x11   :  { %533 = vmatpush3.bf16.msra.mxu1 %v532_v27  ;;  %p563_p3 = por %p562_p2, %p561_p1 }
  0x13   :  { %497 = vmatmul.mubr.msk.f32.vlgmr.msra.gmra.mrb[2].mxu0 %vm27_vm1, %v428_v28  ;;  %p564_p4 = pnand %p563_p3, %p557_p0 }
  0x14   :  { %508 = vmatmul.mubr.msk.f32.vlgmr.msra.gmra.mrb[2].mxu1 %vm27_vm1, %v437_v29 }
  0xde   :  { %v97_v32 = vpop.f32.mrb[0].mxu0 }
  0xdf   :  { %v98_v33 = vadd.f32 %v416_v30, %v97_v32  ;;  %v193_v34 = vpop.f32.mrb[0].mxu1  ;;  %v476_v35 = vpop.f32.mrb[1].mxu0 }
  0xe0   :  { %v194_v36 = vadd.f32 %v425_v31, %v193_v34  ;;  %v487_v37 = vpop.f32.mrb[1].mxu1 }
  0xe1   :  { %v418_v38 = vmul.f32 -1.442695, %v98_v33 }
  0xe2   :  { %v427_v39 = vmul.f32 -1.442695, %v194_v36 }
  0xe3   :  { %540 = vpow2.f32 %v418_v38 }
  0xe4   :  { %542 = vpow2.f32 %v427_v39 }
  0xe6   :  { %v290_v42 = vpop.f32.mrb[2].mxu0 }
  0xe7   :  { %v291_v43 = vadd.f32 %v434_v40, %v290_v42  ;;  %v387_v44 = vpop.f32.mrb[2].mxu1  ;;  %v498_v45 = vpop.f32.mrb[3].mxu0 }
  0xe8   :  { %v388_v46 = vadd.f32 %v443_v41, %v387_v44  ;;  %v509_v47 = vpop.f32.mrb[3].mxu1 }
  0xe9   :  { %v436_v48 = vmul.f32 -1.442695, %v291_v43 }
  0xea   :  { %v445_v49 = vmul.f32 -1.442695, %v388_v46 }
  0xeb   :  { %544 = vpow2.f32 %v436_v48 }
  0xec   :  { %546 = vpow2.f32 %v445_v49 }
  0xed   :  { %v541_v50 = vpop.eup %540 }
  0xee   :  { %v543_v51 = vpop.eup %542  ;;  %v104_v52 = vadd.f32 1.0, %v541_v50 }
  0xef   :  { %v200_v53 = vadd.f32 1.0, %v543_v51 }
  0xf0   :  { %548 = vrcp.f32 %v104_v52 }
  0xf1   :  { %550 = vrcp.f32 %v200_v53 }
  0xf5   :  { %v545_v54 = vpop.eup %544 }
  0xf6   :  { %v547_v55 = vpop.eup %546  ;;  %v297_v56 = vadd.f32 1.0, %v545_v54 }
  0xf7   :  { %v394_v57 = vadd.f32 1.0, %v547_v55 }
  0xf8   :  { %552 = vrcp.f32 %v297_v56 }
  0xf9   :  { %554 = vrcp.f32 %v394_v57 }
  0xfa   :  { %v549_v58 = vpop.eup %548 }
  0xfb   :  { %v551_v59 = vpop.eup %550  ;;  %v107_v60 = vmul.f32 %v549_v58, %v98_v33 }
  0xfc   :  { %v203_v61 = vmul.f32 %v551_v59, %v194_v36 }
  0xfd   :  { %108 = vst [vmem:[#allocation2] sm:$0xff] %v107_v60 }
  0xfe   :  { %205 = vst [vmem:[#allocation2 + $0x8] sm:$0xff] %v203_v61 }
 0x102   :  { %v553_v62 = vpop.eup %552 }
 0x103   :  { %v555_v63 = vpop.eup %554  ;;  %v300_v0 = vmul.f32 %v553_v62, %v291_v43 }
 0x104   :  { %v397_v1 = vmul.f32 %v555_v63, %v388_v46 }
 0x105   :  { %302 = vst [vmem:[#allocation2 + $0x10] sm:$0xff] %v300_v0 }
 0x106   :  { %399 = vst [vmem:[#allocation2 + $0x18] sm:$0xff] %v397_v1 }
 0x107   :  { %567 = shalt.err (!%p564_p4)
}
 0x108   :  { %s568_s8 = scalar_lea.hbm %s701_s3, 512 }
 0x109   :  { %p569_p5 = scmp.ne.s32.totalorder %s701_s3, %s568_s8  ;;  %p572_p6 = scmp.lt.u32.totalorder %s568_s8, %s701_s3 }
 0x10b   :  { %p574_p7 = pnand %p572_p6, %p569_p5 }
 0x10d   :  { %577 = shalt.err (!%p574_p7)
}
 0x10e   :  { %s584_s13 = smov 128   ;;  %s585_s14 = smov 8  }
 0x10f   :  { %411 = dma.vmem_to_hbm [thread:$0]  %s406_s4, 512, %s701_s3, [#allocation3], %s584_s13, %s584_s13, %s585_s14  }
 0x110   :  { %578 = dma.done.wait [#allocation3], 512  }
 0x111   :  { %579 = vsyncadd [#allocation3], 4294966784 }
 0x112   :  { %415 = vsyncpa [#allocation3], 1 }

</bundles_post_ra>
